<compile_context>
chip_gen: v7x
topology: tpu7x:2x2x1
jax: 0.10.0
libtpu: 0.0.40
codegen_flags: <defaults>
</compile_context>

<pallas_src>
import jax
import jax.numpy as jnp
from jax.experimental import pallas as pl
from jax.experimental.pallas import tpu as pltpu


def seq2seq_kernel(x_ref, wih_ref, whh_ref, b_ref, fcw_ref, fcb_ref, out_ref):
    """Shapes (all zero-padded, f32):
        x_ref   : (T*Bp, Fp)   time-major, flattened (t major, batch minor)
        wih_ref : (2, Fp, Hp)  [enc, dec] input->hidden weights (pre-transposed)
        whh_ref : (2, Hp, Hp)  [enc, dec] hidden->hidden weights (pre-transposed)
        b_ref   : (2, 1, Hp)   [enc, dec] combined bias (b_ih + b_hh)
        fcw_ref : (Hp, Cp)     fc weight (pre-transposed)
        fcb_ref : (1, Cp)      fc bias
        out_ref : (Bp, Cp)
    """
    Bp = out_ref.shape[0]
    Hp = whh_ref.shape[-1]
    T = x_ref.shape[0] // Bp

    x = x_ref[...]                                    # (T*Bp, Fp)

    # Hoisted input projections: one MXU matmul per phase, outside the serial
    # dependence chain.
    u_enc = jnp.dot(x, wih_ref[0], preferred_element_type=jnp.float32) + b_ref[0]
    u_dec = jnp.dot(x, wih_ref[1], preferred_element_type=jnp.float32) + b_ref[1]

    whh_enc = whh_ref[0]                              # (Hp, Hp)
    whh_dec = whh_ref[1]

    # Serial recurrence.  T is a static trace-time constant, so the Python
    # loops fully unroll with static, sublane-aligned (Bp-row) slices of u.
    # Encoder starts from h0 = 0; decoder is seeded with the encoder's final h.
    h = jnp.zeros((Bp, Hp), jnp.float32)
    for t in range(T):
        h = jnp.tanh(u_enc[t * Bp:(t + 1) * Bp, :]
                     + jnp.dot(h, whh_enc, preferred_element_type=jnp.float32))
    for t in range(T):
        h = jnp.tanh(u_dec[t * Bp:(t + 1) * Bp, :]
                     + jnp.dot(h, whh_dec, preferred_element_type=jnp.float32))

    # fc head on the last decoder output; lane-dense (Bp, Cp) store.
    out_ref[...] = (jnp.dot(h, fcw_ref[...], preferred_element_type=jnp.float32)
                    + fcb_ref[...]).astype(out_ref.dtype)


def _pad2(a, rows, cols):
    return jnp.pad(a, ((0, rows - a.shape[0]), (0, cols - a.shape[1])))


def seq2seq_forward(x, params, *, input_size, n_hidden, n_class):
    B = x.shape[0]
    x = x.reshape(B, -1, input_size).astype(jnp.float32)     # (B, T, F)
    T = x.shape[1]
    x = jnp.transpose(x, (1, 0, 2))                           # (T, B, F) time-major

    # Sublane/lane padding targets (zero padding is exact, sliced off below).
    Bp = ((B + 7) // 8) * 8
    Hp = ((n_hidden + 127) // 128) * 128
    Fp = ((input_size + 127) // 128) * 128
    Cp = ((n_class + 127) // 128) * 128

    x = jnp.pad(x, ((0, 0), (0, Bp - B), (0, Fp - input_size)))
    x_flat = x.reshape(T * Bp, Fp)                            # (T*Bp, Fp)

    wih = jnp.stack([_pad2(params["enc_wih"].T, Fp, Hp),
                     _pad2(params["dec_wih"].T, Fp, Hp)])                   # (2, Fp, Hp)
    whh = jnp.stack([_pad2(params["enc_whh"].T, Hp, Hp),
                     _pad2(params["dec_whh"].T, Hp, Hp)])                   # (2, Hp, Hp)
    b = jnp.stack([
        jnp.pad(params["enc_bih"] + params["enc_bhh"], (0, Hp - n_hidden))[None, :],
        jnp.pad(params["dec_bih"] + params["dec_bhh"], (0, Hp - n_hidden))[None, :],
    ])                                                                       # (2, 1, Hp)
    fcw = _pad2(params["fc_w"].T, Hp, Cp)                                    # (Hp, Cp)
    fcb = jnp.pad(params["fc_b"], (0, Cp - n_class))[None, :]                # (1, Cp)

    out = pl.pallas_call(
        seq2seq_kernel,
        out_shape=jax.ShapeDtypeStruct((Bp, Cp), jnp.float32),
        grid_spec=pltpu.PrefetchScalarGridSpec(
            num_scalar_prefetch=0,
            grid=(1,),                       # single invocation: everything VMEM-resident
            in_specs=[
                pl.BlockSpec((T * Bp, Fp), lambda i: (0, 0)),
                pl.BlockSpec((2, Fp, Hp), lambda i: (0, 0, 0)),
                pl.BlockSpec((2, Hp, Hp), lambda i: (0, 0, 0)),
                pl.BlockSpec((2, 1, Hp), lambda i: (0, 0, 0)),
                pl.BlockSpec((Hp, Cp), lambda i: (0, 0)),
                pl.BlockSpec((1, Cp), lambda i: (0, 0)),
            ],
            out_specs=pl.BlockSpec((Bp, Cp), lambda i: (0, 0)),
        ),
        compiler_params=pltpu.CompilerParams(
            dimension_semantics=("arbitrary",)),
    )(x_flat, wih, whh, b, fcw, fcb)

    return out[:B, :n_class]


def seq2seq_ref(x, params, *, input_size, n_hidden, n_class):
    """Pure-JAX reference mirroring the PyTorch forward (for validation)."""
    B = x.shape[0]
    x = x.reshape(B, -1, input_size).astype(jnp.float32)
    x = jnp.transpose(x, (1, 0, 2))                           # (T, B, F)

    def rnn(seq, h0, wih, whh, bih, bhh):
        def step(h, x_t):
            h = jnp.tanh(x_t @ wih.T + bih + h @ whh.T + bhh)
            return h, h
        h_last, outs = jax.lax.scan(step, h0, seq)
        return outs, h_last

    h0 = jnp.zeros((B, n_hidden), jnp.float32)
    _, h_t = rnn(x, h0, params["enc_wih"], params["enc_whh"],
                 params["enc_bih"], params["enc_bhh"])
    outs, _ = rnn(x, h_t, params["dec_wih"], params["dec_whh"],
                  params["dec_bih"], params["dec_bhh"])
    return outs[-1] @ params["fc_w"].T + params["fc_b"]


def init_params(key, input_size, n_hidden, n_class):
    keys = jax.random.split(key, 10)
    bound = 1.0 / jnp.sqrt(jnp.float32(n_hidden))
    u = lambda k, shape: jax.random.uniform(k, shape, jnp.float32, -bound, bound)
    return {
        "enc_wih": u(keys[0], (n_hidden, input_size)),
        "enc_whh": u(keys[1], (n_hidden, n_hidden)),
        "enc_bih": u(keys[2], (n_hidden,)),
        "enc_bhh": u(keys[3], (n_hidden,)),
        "dec_wih": u(keys[4], (n_hidden, input_size)),
        "dec_whh": u(keys[5], (n_hidden, n_hidden)),
        "dec_bih": u(keys[6], (n_hidden,)),
        "dec_bhh": u(keys[7], (n_hidden,)),
        "fc_w":    u(keys[8], (n_class, n_hidden)),
        "fc_b":    u(keys[9], (n_class,)),
    }


if __name__ == "__main__":
    # Small shapes consistent with the module: B=2, T=8, F=4, H=32, C=5,
    # num_layers=1 (single-layer RNN as constructed in the module).
    B, T, F, H, C = 2, 8, 4, 32, 5

    key = jax.random.PRNGKey(0)
    k_x, k_p = jax.random.split(key)
    x = jax.random.normal(k_x, (B, T, F), jnp.float32)
    params = init_params(k_p, F, H, C)

    out = seq2seq_forward(x, params, input_size=F, n_hidden=H, n_class=C)
    out = jax.block_until_ready(out)

    ref = seq2seq_ref(x, params, input_size=F, n_hidden=H, n_class=C)
    assert out.shape == (B, C)
    assert jnp.allclose(out, ref, atol=1e-4, rtol=1e-4), (out, ref)

    print("KERNEL_OK")
</pallas_src>

<mosaic_0001>
module attributes {stable_mosaic.version = 11 : i64} {
  func.func @seq2seq_kernel(%arg0: i32, %arg1: memref<64x128xf32, #tpu.memory_space<vmem>>, %arg2: memref<2x128x128xf32, #tpu.memory_space<vmem>>, %arg3: memref<2x128x128xf32, #tpu.memory_space<vmem>>, %arg4: memref<2x1x128xf32, #tpu.memory_space<vmem>>, %arg5: memref<128x128xf32, #tpu.memory_space<vmem>>, %arg6: memref<1x128xf32, #tpu.memory_space<vmem>>, %arg7: memref<8x128xf32, #tpu.memory_space<vmem>>) attributes {dimension_semantics = [#tpu.dimension_semantics<arbitrary>], iteration_bounds = array<i64: 1>, scalar_prefetch = 0 : i64, scratch_operands = 0 : i64, tpu.core_type = #tpu.core_type<tc>, window_params = [{pipeline_mode = #tpu.pipeline_mode<synchronous>, transform_indices = @transform_0, window_bounds = array<i64: 64, 128>}, {pipeline_mode = #tpu.pipeline_mode<synchronous>, transform_indices = @transform_1, window_bounds = array<i64: 2, 128, 128>}, {pipeline_mode = #tpu.pipeline_mode<synchronous>, transform_indices = @transform_2, window_bounds = array<i64: 2, 128, 128>}, {pipeline_mode = #tpu.pipeline_mode<synchronous>, transform_indices = @transform_3, window_bounds = array<i64: 2, 1, 128>}, {pipeline_mode = #tpu.pipeline_mode<synchronous>, transform_indices = @transform_4, window_bounds = array<i64: 128, 128>}, {pipeline_mode = #tpu.pipeline_mode<synchronous>, transform_indices = @transform_5, window_bounds = array<i64: 1, 128>}, {pipeline_mode = #tpu.pipeline_mode<synchronous>, transform_indices = @transform_6, window_bounds = array<i64: 8, 128>}]} {
    %c0 = arith.constant 0 : index
    %c0_0 = arith.constant 0 : index
    %0 = vector.load %arg1[%c0, %c0_0] : memref<64x128xf32, #tpu.memory_space<vmem>>, vector<64x128xf32>
    %c0_1 = arith.constant 0 : index
    %c0_2 = arith.constant 0 : index
    %c0_3 = arith.constant 0 : index
    %1 = vector.load %arg2[%c0_1, %c0_2, %c0_3] : memref<2x128x128xf32, #tpu.memory_space<vmem>>, vector<1x128x128xf32>
    %2 = vector.shape_cast %1 : vector<1x128x128xf32> to vector<128x128xf32>
    %cst = arith.constant dense<0.000000e+00> : vector<64x128xf32>
    %3 = tpu.matmul %0, %2, %cst {dimension_numbers = #tpu.dot_dimension_numbers<[1], [0], [0], [1], [0, 0, 1, 1], [], []>} : vector<64x128xf32>, vector<128x128xf32>, vector<64x128xf32> -> vector<64x128xf32>
    %c0_4 = arith.constant 0 : index
    %c0_5 = arith.constant 0 : index
    %c0_6 = arith.constant 0 : index
    %4 = vector.load %arg4[%c0_4, %c0_5, %c0_6] : memref<2x1x128xf32, #tpu.memory_space<vmem>>, vector<1x1x128xf32>
    %5 = vector.shape_cast %4 : vector<1x1x128xf32> to vector<1x128xf32>
    %6 = vector.broadcast %5 : vector<1x128xf32> to vector<64x128xf32>
    %7 = arith.addf %3, %6 : vector<64x128xf32>
    %c1 = arith.constant 1 : index
    %c0_7 = arith.constant 0 : index
    %c0_8 = arith.constant 0 : index
    %8 = vector.load %arg2[%c1, %c0_7, %c0_8] : memref<2x128x128xf32, #tpu.memory_space<vmem>>, vector<1x128x128xf32>
    %9 = vector.shape_cast %8 : vector<1x128x128xf32> to vector<128x128xf32>
    %cst_9 = arith.constant dense<0.000000e+00> : vector<64x128xf32>
    %10 = tpu.matmul %0, %9, %cst_9 {dimension_numbers = #tpu.dot_dimension_numbers<[1], [0], [0], [1], [0, 0, 1, 1], [], []>} : vector<64x128xf32>, vector<128x128xf32>, vector<64x128xf32> -> vector<64x128xf32>
    %c1_10 = arith.constant 1 : index
    %c0_11 = arith.constant 0 : index
    %c0_12 = arith.constant 0 : index
    %11 = vector.load %arg4[%c1_10, %c0_11, %c0_12] : memref<2x1x128xf32, #tpu.memory_space<vmem>>, vector<1x1x128xf32>
    %12 = vector.shape_cast %11 : vector<1x1x128xf32> to vector<1x128xf32>
    %13 = vector.broadcast %12 : vector<1x128xf32> to vector<64x128xf32>
    %14 = arith.addf %10, %13 : vector<64x128xf32>
    %c0_13 = arith.constant 0 : index
    %c0_14 = arith.constant 0 : index
    %c0_15 = arith.constant 0 : index
    %15 = vector.load %arg3[%c0_13, %c0_14, %c0_15] : memref<2x128x128xf32, #tpu.memory_space<vmem>>, vector<1x128x128xf32>
    %16 = vector.shape_cast %15 : vector<1x128x128xf32> to vector<128x128xf32>
    %c1_16 = arith.constant 1 : index
    %c0_17 = arith.constant 0 : index
    %c0_18 = arith.constant 0 : index
    %17 = vector.load %arg3[%c1_16, %c0_17, %c0_18] : memref<2x128x128xf32, #tpu.memory_space<vmem>>, vector<1x128x128xf32>
    %18 = vector.shape_cast %17 : vector<1x128x128xf32> to vector<128x128xf32>
    %cst_19 = arith.constant 0.000000e+00 : f32
    %19 = vector.broadcast %cst_19 : f32 to vector<8x128xf32>
    %20 = vector.extract_strided_slice %7 {offsets = [0, 0], sizes = [8, 128], strides = [1, 1]} : vector<64x128xf32> to vector<8x128xf32>
    %cst_20 = arith.constant dense<0.000000e+00> : vector<8x128xf32>
    %21 = tpu.matmul %19, %16, %cst_20 {dimension_numbers = #tpu.dot_dimension_numbers<[1], [0], [0], [1], [0, 0, 1, 1], [], []>} : vector<8x128xf32>, vector<128x128xf32>, vector<8x128xf32> -> vector<8x128xf32>
    %22 = arith.addf %20, %21 : vector<8x128xf32>
    %23 = math.tanh %22 : vector<8x128xf32>
    %24 = vector.extract_strided_slice %7 {offsets = [8, 0], sizes = [8, 128], strides = [1, 1]} : vector<64x128xf32> to vector<8x128xf32>
    %cst_21 = arith.constant dense<0.000000e+00> : vector<8x128xf32>
    %25 = tpu.matmul %23, %16, %cst_21 {dimension_numbers = #tpu.dot_dimension_numbers<[1], [0], [0], [1], [0, 0, 1, 1], [], []>} : vector<8x128xf32>, vector<128x128xf32>, vector<8x128xf32> -> vector<8x128xf32>
    %26 = arith.addf %24, %25 : vector<8x128xf32>
    %27 = math.tanh %26 : vector<8x128xf32>
    %28 = vector.extract_strided_slice %7 {offsets = [16, 0], sizes = [8, 128], strides = [1, 1]} : vector<64x128xf32> to vector<8x128xf32>
    %cst_22 = arith.constant dense<0.000000e+00> : vector<8x128xf32>
    %29 = tpu.matmul %27, %16, %cst_22 {dimension_numbers = #tpu.dot_dimension_numbers<[1], [0], [0], [1], [0, 0, 1, 1], [], []>} : vector<8x128xf32>, vector<128x128xf32>, vector<8x128xf32> -> vector<8x128xf32>
    %30 = arith.addf %28, %29 : vector<8x128xf32>
    %31 = math.tanh %30 : vector<8x128xf32>
    %32 = vector.extract_strided_slice %7 {offsets = [24, 0], sizes = [8, 128], strides = [1, 1]} : vector<64x128xf32> to vector<8x128xf32>
    %cst_23 = arith.constant dense<0.000000e+00> : vector<8x128xf32>
    %33 = tpu.matmul %31, %16, %cst_23 {dimension_numbers = #tpu.dot_dimension_numbers<[1], [0], [0], [1], [0, 0, 1, 1], [], []>} : vector<8x128xf32>, vector<128x128xf32>, vector<8x128xf32> -> vector<8x128xf32>
    %34 = arith.addf %32, %33 : vector<8x128xf32>
    %35 = math.tanh %34 : vector<8x128xf32>
    %36 = vector.extract_strided_slice %7 {offsets = [32, 0], sizes = [8, 128], strides = [1, 1]} : vector<64x128xf32> to vector<8x128xf32>
    %cst_24 = arith.constant dense<0.000000e+00> : vector<8x128xf32>
    %37 = tpu.matmul %35, %16, %cst_24 {dimension_numbers = #tpu.dot_dimension_numbers<[1], [0], [0], [1], [0, 0, 1, 1], [], []>} : vector<8x128xf32>, vector<128x128xf32>, vector<8x128xf32> -> vector<8x128xf32>
    %38 = arith.addf %36, %37 : vector<8x128xf32>
    %39 = math.tanh %38 : vector<8x128xf32>
    %40 = vector.extract_strided_slice %7 {offsets = [40, 0], sizes = [8, 128], strides = [1, 1]} : vector<64x128xf32> to vector<8x128xf32>
    %cst_25 = arith.constant dense<0.000000e+00> : vector<8x128xf32>
    %41 = tpu.matmul %39, %16, %cst_25 {dimension_numbers = #tpu.dot_dimension_numbers<[1], [0], [0], [1], [0, 0, 1, 1], [], []>} : vector<8x128xf32>, vector<128x128xf32>, vector<8x128xf32> -> vector<8x128xf32>
    %42 = arith.addf %40, %41 : vector<8x128xf32>
    %43 = math.tanh %42 : vector<8x128xf32>
    %44 = vector.extract_strided_slice %7 {offsets = [48, 0], sizes = [8, 128], strides = [1, 1]} : vector<64x128xf32> to vector<8x128xf32>
    %cst_26 = arith.constant dense<0.000000e+00> : vector<8x128xf32>
    %45 = tpu.matmul %43, %16, %cst_26 {dimension_numbers = #tpu.dot_dimension_numbers<[1], [0], [0], [1], [0, 0, 1, 1], [], []>} : vector<8x128xf32>, vector<128x128xf32>, vector<8x128xf32> -> vector<8x128xf32>
    %46 = arith.addf %44, %45 : vector<8x128xf32>
    %47 = math.tanh %46 : vector<8x128xf32>
    %48 = vector.extract_strided_slice %7 {offsets = [56, 0], sizes = [8, 128], strides = [1, 1]} : vector<64x128xf32> to vector<8x128xf32>
    %cst_27 = arith.constant dense<0.000000e+00> : vector<8x128xf32>
    %49 = tpu.matmul %47, %16, %cst_27 {dimension_numbers = #tpu.dot_dimension_numbers<[1], [0], [0], [1], [0, 0, 1, 1], [], []>} : vector<8x128xf32>, vector<128x128xf32>, vector<8x128xf32> -> vector<8x128xf32>
    %50 = arith.addf %48, %49 : vector<8x128xf32>
    %51 = math.tanh %50 : vector<8x128xf32>
    %52 = vector.extract_strided_slice %14 {offsets = [0, 0], sizes = [8, 128], strides = [1, 1]} : vector<64x128xf32> to vector<8x128xf32>
    %cst_28 = arith.constant dense<0.000000e+00> : vector<8x128xf32>
    %53 = tpu.matmul %51, %18, %cst_28 {dimension_numbers = #tpu.dot_dimension_numbers<[1], [0], [0], [1], [0, 0, 1, 1], [], []>} : vector<8x128xf32>, vector<128x128xf32>, vector<8x128xf32> -> vector<8x128xf32>
    %54 = arith.addf %52, %53 : vector<8x128xf32>
    %55 = math.tanh %54 : vector<8x128xf32>
    %56 = vector.extract_strided_slice %14 {offsets = [8, 0], sizes = [8, 128], strides = [1, 1]} : vector<64x128xf32> to vector<8x128xf32>
    %cst_29 = arith.constant dense<0.000000e+00> : vector<8x128xf32>
    %57 = tpu.matmul %55, %18, %cst_29 {dimension_numbers = #tpu.dot_dimension_numbers<[1], [0], [0], [1], [0, 0, 1, 1], [], []>} : vector<8x128xf32>, vector<128x128xf32>, vector<8x128xf32> -> vector<8x128xf32>
    %58 = arith.addf %56, %57 : vector<8x128xf32>
    %59 = math.tanh %58 : vector<8x128xf32>
    %60 = vector.extract_strided_slice %14 {offsets = [16, 0], sizes = [8, 128], strides = [1, 1]} : vector<64x128xf32> to vector<8x128xf32>
    %cst_30 = arith.constant dense<0.000000e+00> : vector<8x128xf32>
    %61 = tpu.matmul %59, %18, %cst_30 {dimension_numbers = #tpu.dot_dimension_numbers<[1], [0], [0], [1], [0, 0, 1, 1], [], []>} : vector<8x128xf32>, vector<128x128xf32>, vector<8x128xf32> -> vector<8x128xf32>
    %62 = arith.addf %60, %61 : vector<8x128xf32>
    %63 = math.tanh %62 : vector<8x128xf32>
    %64 = vector.extract_strided_slice %14 {offsets = [24, 0], sizes = [8, 128], strides = [1, 1]} : vector<64x128xf32> to vector<8x128xf32>
    %cst_31 = arith.constant dense<0.000000e+00> : vector<8x128xf32>
    %65 = tpu.matmul %63, %18, %cst_31 {dimension_numbers = #tpu.dot_dimension_numbers<[1], [0], [0], [1], [0, 0, 1, 1], [], []>} : vector<8x128xf32>, vector<128x128xf32>, vector<8x128xf32> -> vector<8x128xf32>
    %66 = arith.addf %64, %65 : vector<8x128xf32>
    %67 = math.tanh %66 : vector<8x128xf32>
    %68 = vector.extract_strided_slice %14 {offsets = [32, 0], sizes = [8, 128], strides = [1, 1]} : vector<64x128xf32> to vector<8x128xf32>
    %cst_32 = arith.constant dense<0.000000e+00> : vector<8x128xf32>
    %69 = tpu.matmul %67, %18, %cst_32 {dimension_numbers = #tpu.dot_dimension_numbers<[1], [0], [0], [1], [0, 0, 1, 1], [], []>} : vector<8x128xf32>, vector<128x128xf32>, vector<8x128xf32> -> vector<8x128xf32>
    %70 = arith.addf %68, %69 : vector<8x128xf32>
    %71 = math.tanh %70 : vector<8x128xf32>
    %72 = vector.extract_strided_slice %14 {offsets = [40, 0], sizes = [8, 128], strides = [1, 1]} : vector<64x128xf32> to vector<8x128xf32>
    %cst_33 = arith.constant dense<0.000000e+00> : vector<8x128xf32>
    %73 = tpu.matmul %71, %18, %cst_33 {dimension_numbers = #tpu.dot_dimension_numbers<[1], [0], [0], [1], [0, 0, 1, 1], [], []>} : vector<8x128xf32>, vector<128x128xf32>, vector<8x128xf32> -> vector<8x128xf32>
    %74 = arith.addf %72, %73 : vector<8x128xf32>
    %75 = math.tanh %74 : vector<8x128xf32>
    %76 = vector.extract_strided_slice %14 {offsets = [48, 0], sizes = [8, 128], strides = [1, 1]} : vector<64x128xf32> to vector<8x128xf32>
    %cst_34 = arith.constant dense<0.000000e+00> : vector<8x128xf32>
    %77 = tpu.matmul %75, %18, %cst_34 {dimension_numbers = #tpu.dot_dimension_numbers<[1], [0], [0], [1], [0, 0, 1, 1], [], []>} : vector<8x128xf32>, vector<128x128xf32>, vector<8x128xf32> -> vector<8x128xf32>
    %78 = arith.addf %76, %77 : vector<8x128xf32>
    %79 = math.tanh %78 : vector<8x128xf32>
    %80 = vector.extract_strided_slice %14 {offsets = [56, 0], sizes = [8, 128], strides = [1, 1]} : vector<64x128xf32> to vector<8x128xf32>
    %cst_35 = arith.constant dense<0.000000e+00> : vector<8x128xf32>
    %81 = tpu.matmul %79, %18, %cst_35 {dimension_numbers = #tpu.dot_dimension_numbers<[1], [0], [0], [1], [0, 0, 1, 1], [], []>} : vector<8x128xf32>, vector<128x128xf32>, vector<8x128xf32> -> vector<8x128xf32>
    %82 = arith.addf %80, %81 : vector<8x128xf32>
    %83 = math.tanh %82 : vector<8x128xf32>
    %c0_36 = arith.constant 0 : index
    %c0_37 = arith.constant 0 : index
    %84 = vector.load %arg5[%c0_36, %c0_37] : memref<128x128xf32, #tpu.memory_space<vmem>>, vector<128x128xf32>
    %cst_38 = arith.constant dense<0.000000e+00> : vector<8x128xf32>
    %85 = tpu.matmul %83, %84, %cst_38 {dimension_numbers = #tpu.dot_dimension_numbers<[1], [0], [0], [1], [0, 0, 1, 1], [], []>} : vector<8x128xf32>, vector<128x128xf32>, vector<8x128xf32> -> vector<8x128xf32>
    %c0_39 = arith.constant 0 : index
    %c0_40 = arith.constant 0 : index
    %86 = vector.load %arg6[%c0_39, %c0_40] : memref<1x128xf32, #tpu.memory_space<vmem>>, vector<1x128xf32>
    %87 = vector.broadcast %86 : vector<1x128xf32> to vector<8x128xf32>
    %88 = arith.addf %85, %87 : vector<8x128xf32>
    %c0_41 = arith.constant 0 : index
    %c0_42 = arith.constant 0 : index
    %89 = vector.load %arg7[%c0_41, %c0_42] : memref<8x128xf32, #tpu.memory_space<vmem>>, vector<8x128xf32>
    tpu.vector_store %arg7[%c0_41, %c0_42], %88 {strides = array<i32>} : memref<8x128xf32, #tpu.memory_space<vmem>>, vector<8x128xf32>,
    return
  }
  func.func @transform_0(%arg0: i32) -> (i32, i32) {
    %c0_i32 = arith.constant 0 : i32
    %c0_i32_0 = arith.constant 0 : i32
    %c0_i32_1 = arith.constant 0 : i32
    return %c0_i32, %c0_i32_0 : i32, i32
  }
  func.func @transform_1(%arg0: i32) -> (i32, i32, i32) {
    %c0_i32 = arith.constant 0 : i32
    %c0_i32_0 = arith.constant 0 : i32
    %c0_i32_1 = arith.constant 0 : i32
    %c0_i32_2 = arith.constant 0 : i32
    return %c0_i32, %c0_i32_0, %c0_i32_1 : i32, i32, i32
  }
  func.func @transform_2(%arg0: i32) -> (i32, i32, i32) {
    %c0_i32 = arith.constant 0 : i32
    %c0_i32_0 = arith.constant 0 : i32
    %c0_i32_1 = arith.constant 0 : i32
    %c0_i32_2 = arith.constant 0 : i32
    return %c0_i32, %c0_i32_0, %c0_i32_1 : i32, i32, i32
  }
  func.func @transform_3(%arg0: i32) -> (i32, i32, i32) {
    %c0_i32 = arith.constant 0 : i32
    %c0_i32_0 = arith.constant 0 : i32
    %c0_i32_1 = arith.constant 0 : i32
    %c0_i32_2 = arith.constant 0 : i32
    return %c0_i32, %c0_i32_0, %c0_i32_1 : i32, i32, i32
  }
  func.func @transform_4(%arg0: i32) -> (i32, i32) {
    %c0_i32 = arith.constant 0 : i32
    %c0_i32_0 = arith.constant 0 : i32
    %c0_i32_1 = arith.constant 0 : i32
    return %c0_i32, %c0_i32_0 : i32, i32
  }
  func.func @transform_5(%arg0: i32) -> (i32, i32) {
    %c0_i32 = arith.constant 0 : i32
    %c0_i32_0 = arith.constant 0 : i32
    %c0_i32_1 = arith.constant 0 : i32
    return %c0_i32, %c0_i32_0 : i32, i32
  }
  func.func @transform_6(%arg0: i32) -> (i32, i32) {
    %c0_i32 = arith.constant 0 : i32
    %c0_i32_0 = arith.constant 0 : i32
    %c0_i32_1 = arith.constant 0 : i32
    return %c0_i32, %c0_i32_0 : i32, i32
  }
}

</mosaic_0001>

<bundles_post_ra>
// kernel: tpu_custom_call.1
= control target key start
LH: loop header
LB: loop body
LE: loop exit
PB: predicated region body
PF: predicated region fallthrough
CT: control target
= control target key end

     0   :  { %11 = vsyncpa [#allocation3], 0  ;;  %s3848_s0 = inlined_call_operand.hbm [shape: f32[64,128], index: 0, kind: input, shape index: {}]   ;;  %s3849_s1 = inlined_call_operand.hbm [shape: f32[2,128,128], index: 1, kind: input, shape index: {}]   ;;  %s3850_s2 = inlined_call_operand.hbm [shape: f32[2,128,128], index: 2, kind: input, shape index: {}]   ;;  %s3851_s3 = inlined_call_operand.vmem [shape: f32[2,1,128], index: 3, kind: input, shape index: {}]   ;;  %s3852_s4 = inlined_call_operand.hbm [shape: f32[128,128], index: 4, kind: input, shape index: {}]   ;;  %s3853_s5 = inlined_call_operand.vmem [shape: f32[1,128], index: 5, kind: input, shape index: {}]   ;;  %s3854_s6 = inlined_call_operand.hbm [shape: f32[8,128], index: 6, kind: output, shape index: {}]  }
   0x1   :  { %12 = vsyncpa [#allocation6], 0 }
   0x2   :  { %13 = vsyncpa [#allocation9], 0 }
   0x3   :  { %14 = vsyncpa [#allocation4], 0  ;;  %s3297_s21 = smov [#allocation5]   ;;  %s3298_s23 = smov [#allocation2]  }
   0x4   :  { %s32_s22 = sshll.u32 %s3297_s21, 4  ;;  %s20_s24 = sshll.u32 %s3298_s23, 4  ;;  %s33_s22 = int_to_ptr.vmem [resolvable:$true] %s32_s22  ;;  %s3342_s24 = int_to_ptr.vmem [resolvable:$true] %s20_s24 }
   0x5   :  { %s3179_s27 = scalar_lea.hbm %s3849_s1, 4096 }
   0x6   :  { %p3180_p0 = scmp.ne.s32.totalorder %s3849_s1, %s3179_s27  ;;  %p3183_p1 = scmp.lt.u32.totalorder %s3179_s27, %s3849_s1 }
   0x8   :  { %p3185_p2 = pnand %p3183_p1, %p3180_p0 }
   0xa   :  { %3188 = shalt.err (!%p3185_p2)
}
   0xb   :  { %s3189_s8 = scalar_lea.vmem %s33_s22, 4096  ;;  %p3194_p4 = scmp.lt.s32.totalorder %s33_s22, %s33_s22 }
   0xc   :  { %p3190_p3 = scmp.ne.s32.totalorder %s33_s22, %s3189_s8  ;;  %p3195_p5 = scmp.lt.s32.totalorder %s3189_s8, %s3189_s8 }
   0xe   :  { %p3196_p6 = por %p3195_p5, %p3194_p4 }
  0x10   :  { %p3197_p7 = pnand %p3196_p6, %p3190_p3 }
  0x12   :  { %3200 = shalt.err (!%p3197_p7)
}
  0x13   :  { %s3299_s9 = smov 128   ;;  %s3300_s10 = smov 8  }
  0x14   :  { %38 = dma.hbm_to_vmem [thread:$0]  %s3849_s1, 4096, %s33_s22, [#allocation6], %s3299_s9, %s3299_s9, %s3300_s10  }
  0x15   :  { %s3201_s15 = scalar_lea.hbm %s3848_s0, 1024 }
  0x16   :  { %p3202_p8 = scmp.ne.s32.totalorder %s3848_s0, %s3201_s15  ;;  %p3205_p9 = scmp.lt.u32.totalorder %s3201_s15, %s3848_s0 }
  0x18   :  { %p3207_p10 = pnand %p3205_p9, %p3202_p8 }
  0x1a   :  { %3210 = shalt.err (!%p3207_p10)
}
  0x1b   :  { %s3211_s20 = scalar_lea.vmem %s3342_s24, 1024  ;;  %p3216_p12 = scmp.lt.s32.totalorder %s3342_s24, %s3342_s24 }
  0x1c   :  { %p3212_p11 = scmp.ne.s32.totalorder %s3342_s24, %s3211_s20  ;;  %p3217_p13 = scmp.lt.s32.totalorder %s3211_s20, %s3211_s20 }
  0x1e   :  { %p3218_p0 = por %p3217_p13, %p3216_p12 }
  0x20   :  { %p3219_p1 = pnand %p3218_p0, %p3212_p11 }
  0x22   :  { %3222 = shalt.err (!%p3219_p1)
}
  0x23   :  { %26 = dma.hbm_to_vmem [thread:$0]  %s3848_s0, 1024, %s3342_s24, [#allocation3], %s3299_s9, %s3299_s9, %s3300_s10  }
  0x24   :  { %s3301_s22 = smov [#allocation7]   ;;  %s3302_s25 = smov [#allocation8]  }
  0x25   :  { %s44_s23 = sshll.u32 %s3301_s22, 4  ;;  %s58_s26 = sshll.u32 %s3302_s25, 4  ;;  %s45_s23 = int_to_ptr.vmem [resolvable:$true] %s44_s23  ;;  %s3379_s26 = int_to_ptr.vmem [resolvable:$true] %s58_s26 }
  0x26   :  { %s3223_s29 = scalar_lea.hbm %s3850_s2, 4096 }
  0x27   :  { %p3224_p2 = scmp.ne.s32.totalorder %s3850_s2, %s3223_s29  ;;  %p3227_p3 = scmp.lt.u32.totalorder %s3223_s29, %s3850_s2 }
  0x29   :  { %p3229_p4 = pnand %p3227_p3, %p3224_p2 }
  0x2b   :  { %3232 = shalt.err (!%p3229_p4)
}
  0x2c   :  { %s3233_s0 = scalar_lea.vmem %s45_s23, 4096  ;;  %p3238_p6 = scmp.lt.s32.totalorder %s45_s23, %s45_s23 }
  0x2d   :  { %p3234_p5 = scmp.ne.s32.totalorder %s45_s23, %s3233_s0  ;;  %p3239_p7 = scmp.lt.s32.totalorder %s3233_s0, %s3233_s0 }
  0x2f   :  { %p3240_p8 = por %p3239_p7, %p3238_p6 }
  0x31   :  { %p3241_p9 = pnand %p3240_p8, %p3234_p5 }
  0x33   :  { %3244 = shalt.err (!%p3241_p9)
}
  0x34   :  { %50 = dma.hbm_to_vmem [thread:$0]  %s3850_s2, 4096, %s45_s23, [#allocation6], %s3299_s9, %s3299_s9, %s3300_s10  }
  0x35   :  { %s3245_s15 = scalar_lea.hbm %s3852_s4, 2048 }
  0x36   :  { %p3246_p10 = scmp.ne.s32.totalorder %s3852_s4, %s3245_s15  ;;  %p3249_p11 = scmp.lt.u32.totalorder %s3245_s15, %s3852_s4 }
  0x38   :  { %p3251_p12 = pnand %p3249_p11, %p3246_p10 }
  0x3a   :  { %3254 = shalt.err (!%p3251_p12)
}
  0x3b   :  { %s3255_s20 = scalar_lea.vmem %s3379_s26, 2048  ;;  %p3260_p0 = scmp.lt.s32.totalorder %s3379_s26, %s3379_s26 }
  0x3c   :  { %p3256_p13 = scmp.ne.s32.totalorder %s3379_s26, %s3255_s20  ;;  %p3261_p1 = scmp.lt.s32.totalorder %s3255_s20, %s3255_s20 }
  0x3e   :  { %p3262_p2 = por %p3261_p1, %p3260_p0 }
  0x40   :  { %p3263_p3 = pnand %p3262_p2, %p3256_p13 }
  0x42   :  { %3266 = shalt.err (!%p3263_p3)
}
  0x43   :  { %64 = dma.hbm_to_vmem [thread:$0]  %s3852_s4, 2048, %s3379_s26, [#allocation9], %s3299_s9, %s3299_s9, %s3300_s10  }
  0x44   :  { %3289 = dma.done.wait [#allocation3], 1024  }
  0x45   :  { %3290 = vsyncadd [#allocation3], 4294966272 }
  0x46   :  { %3291 = dma.done.wait [#allocation6], 8192  }
  0x47   :  { %3292 = vsyncadd [#allocation6], 4294959104 }
  0x48   :  { %3293 = dma.done.wait [#allocation9], 2048  }
  0x49   :  { %3294 = vsyncadd [#allocation9], 4294965248  ;;  %v87_v0 = vld [vmem:[#allocation5] sm:$0xff]  ;;  %v88_v1 = vld [vmem:[#allocation5 + $0x8] sm:$0xff]  ;;  %v3303_v44 = vmov 0.0|0.0   ;;  %vm3304_vm0 = vmmov 0  }
  0x4a   :  { %v89_v2 = vld [vmem:[#allocation5 + $0x10] sm:$0xff]  ;;  %v2665_v3 = vpack.c.bf16 %v88_v1, %v87_v0  ;;  %v90_v4 = vld [vmem:[#allocation5 + $0x18] sm:$0xff]  ;;  %v91_v6 = vld [vmem:[#allocation5 + $0x20] sm:$0xff]  ;;  %v3305_v63 = vmov 0.0   ;;  %s3306_s23 = smov [#allocation10]  }
  0x4b   :  { %v2669_v5 = vpack.c.bf16 %v90_v4, %v89_v2  ;;  %v92_v7 = vld [vmem:[#allocation5 + $0x28] sm:$0xff]  ;;  %v79_v9 = vld [vmem:[#allocation2] sm:$0xff]  ;;  %v93_v10 = vld [vmem:[#allocation5 + $0x30] sm:$0xff]  ;;  %s1630_s25 = sshll.u32 %s3306_s23, 4  ;;  %s1631_s25 = int_to_ptr.vmem [resolvable:$true] %s1630_s25 }
  0x4c   :  { %2666 = vmatprep.subr.bf16.mxu0 %v2665_v3  ;;  %v2673_v8 = vpack.c.bf16 %v92_v7, %v91_v6  ;;  %v94_v11 = vld [vmem:[#allocation5 + $0x38] sm:$0xff]  ;;  %2014 = vmatprep.mubr.f32.mxu0 %v79_v9  ;;  %v95_v13 = vld [vmem:[#allocation5 + $0x40] sm:$0xff]  ;;  %v96_v14 = vld [vmem:[#allocation5 + $0x48] sm:$0xff]  ;;  %s3267_s26 = scalar_lea.vmem %s1631_s25, 128  ;;  %p3272_p5 = scmp.lt.s32.totalorder %s1631_s25, %s1631_s25 }
  0x4d   :  { %2668 = vmatpush3.bf16.msra.mxu0 %v2665_v3  ;;  %2058 = vmatprep.mubr.f32.mxu1 %v79_v9  ;;  %v2677_v12 = vpack.c.bf16 %v94_v11, %v93_v10  ;;  %v2681_v15 = vpack.c.bf16 %v96_v14, %v95_v13  ;;  %v97_v16 = vld [vmem:[#allocation5 + $0x50] sm:$0xff]  ;;  %v216_v17 = vld [vmem:[#allocation5 + $0x80] sm:$0xff]  ;;  %v217_v18 = vld [vmem:[#allocation5 + $0x88] sm:$0xff]  ;;  %p3268_p4 = scmp.ne.s32.totalorder %s1631_s25, %s3267_s26  ;;  %p3273_p6 = scmp.lt.s32.totalorder %s3267_s26, %s3267_s26 }
  0x4e   :  { %2670 = vmatprep.subr.bf16.mxu0 %v2669_v5  ;;  %v98_v19 = vld [vmem:[#allocation5 + $0x58] sm:$0xff]  ;;  %v2697_v20 = vpack.c.bf16 %v217_v18, %v216_v17  ;;  %v218_v21 = vld [vmem:[#allocation5 + $0x90] sm:$0xff]  ;;  %v220_v24 = vld [vmem:[#allocation5 + $0xa0] sm:$0xff] }
  0x4f   :  { %v219_v22 = vld [vmem:[#allocation5 + $0x98] sm:$0xff]  ;;  %v221_v25 = vld [vmem:[#allocation5 + $0xa8] sm:$0xff]  ;;  %v2685_v26 = vpack.c.bf16 %v98_v19, %v97_v16  ;;  %v99_v27 = vld [vmem:[#allocation5 + $0x60] sm:$0xff]  ;;  %p3274_p7 = por %p3273_p6, %p3272_p5 }
  0x50   :  { %v2701_v23 = vpack.c.bf16 %v219_v22, %v218_v21  ;;  %2698 = vmatprep.subr.bf16.mxu1 %v2697_v20  ;;  %v100_v28 = vld [vmem:[#allocation5 + $0x68] sm:$0xff]  ;;  %v2705_v29 = vpack.c.bf16 %v221_v25, %v220_v24  ;;  %v222_v30 = vld [vmem:[#allocation5 + $0xb0] sm:$0xff]  ;;  %v223_v31 = vld [vmem:[#allocation5 + $0xb8] sm:$0xff] }
  0x51   :  { %2672 = vmatpush3.bf16.msra.mxu0 %v2669_v5  ;;  %2700 = vmatpush3.bf16.msra.mxu1 %v2697_v20  ;;  %v2689_v32 = vpack.c.bf16 %v100_v28, %v99_v27  ;;  %v101_v33 = vld [vmem:[#allocation5 + $0x70] sm:$0xff]  ;;  %v102_v34 = vld [vmem:[#allocation5 + $0x78] sm:$0xff]  ;;  %v2709_v35 = vpack.c.bf16 %v223_v31, %v222_v30  ;;  %v224_v36 = vld [vmem:[#allocation5 + $0xc0] sm:$0xff]  ;;  %p3275_p8 = pnand %p3274_p7, %p3268_p4 }
  0x52   :  { %2674 = vmatprep.subr.bf16.mxu0 %v2673_v8  ;;  %2702 = vmatprep.subr.bf16.mxu1 %v2701_v23  ;;  %v225_v37 = vld [vmem:[#allocation5 + $0xc8] sm:$0xff]  ;;  %v2693_v38 = vpack.c.bf16 %v102_v34, %v101_v33  ;;  %v345_v40 = vld [vmem:[#allocation7] sm:$0xff]  ;;  %v347_v45 = vld [vmem:[#allocation7 + $0x10] sm:$0xff] }
  0x53   :  { %v2713_v39 = vpack.c.bf16 %v225_v37, %v224_v36  ;;  %v346_v41 = vld [vmem:[#allocation7 + $0x8] sm:$0xff]  ;;  %v348_v46 = vld [vmem:[#allocation7 + $0x18] sm:$0xff]  ;;  %v3421_v47 = vld [vmem:[#allocation2 + $0x10] sm:$0xff] }
  0x54   :  { %v3416_v42 = vld [vmem:[#allocation2 + $0x8] sm:$0xff]  ;;  %v3418_v43 = vpack.c.bf16 %v346_v41, %v345_v40  ;;  %v3425_v48 = vpack.c.bf16 %v348_v46, %v347_v45  ;;  %v3428_v49 = vld [vmem:[#allocation2 + $0x18] sm:$0xff]  ;;  %v349_v50 = vld [vmem:[#allocation7 + $0x20] sm:$0xff] }
  0x55   :  { %2676 = vmatpush3.bf16.msra.mxu0 %v2673_v8  ;;  %2704 = vmatpush3.bf16.msra.mxu1 %v2701_v23  ;;  %v350_v51 = vld [vmem:[#allocation7 + $0x28] sm:$0xff]  ;;  %v3431_v52 = vld [vmem:[#allocation2 + $0x20] sm:$0xff]  ;;  %v351_v55 = vld [vmem:[#allocation7 + $0x30] sm:$0xff] }
  0x56   :  { %2678 = vmatprep.subr.bf16.mxu0 %v2677_v12  ;;  %2706 = vmatprep.subr.bf16.mxu1 %v2705_v29  ;;  %v3435_v53 = vpack.c.bf16 %v350_v51, %v349_v50  ;;  %v3438_v54 = vld [vmem:[#allocation2 + $0x28] sm:$0xff]  ;;  %v352_v56 = vld [vmem:[#allocation7 + $0x38] sm:$0xff]  ;;  %v3441_v57 = vld [vmem:[#allocation2 + $0x30] sm:$0xff] }
  0x57   :  { %v3445_v58 = vpack.c.bf16 %v352_v56, %v351_v55  ;;  %v3448_v59 = vld [vmem:[#allocation2 + $0x38] sm:$0xff]  ;;  %v353_v60 = vld [vmem:[#allocation7 + $0x40] sm:$0xff]  ;;  %v354_v61 = vld [vmem:[#allocation7 + $0x48] sm:$0xff] }
  0x58   :  { %v3453_v62 = vpack.c.bf16 %v354_v61, %v353_v60  ;;  %v355_v0 = vld [vmem:[#allocation7 + $0x50] sm:$0xff]  ;;  %v356_v1 = vld [vmem:[#allocation7 + $0x58] sm:$0xff]  ;;  %v357_v3 = vld [vmem:[#allocation7 + $0x60] sm:$0xff] }
  0x59   :  { %2680 = vmatpush3.bf16.msra.mxu0 %v2677_v12  ;;  %2708 = vmatpush3.bf16.msra.mxu1 %v2705_v29  ;;  %v3459_v2 = vpack.c.bf16 %v356_v1, %v355_v0  ;;  %v358_v4 = vld [vmem:[#allocation7 + $0x68] sm:$0xff]  ;;  %v359_v6 = vld [vmem:[#allocation7 + $0x70] sm:$0xff]  ;;  %v360_v7 = vld [vmem:[#allocation7 + $0x78] sm:$0xff] }
  0x5a   :  { %2682 = vmatprep.subr.bf16.mxu0 %v2681_v15  ;;  %2710 = vmatprep.subr.bf16.mxu1 %v2709_v35  ;;  %v3463_v5 = vpack.c.bf16 %v358_v4, %v357_v3  ;;  %v3467_v8 = vpack.c.bf16 %v360_v7, %v359_v6  ;;  %v226_v9 = vld [vmem:[#allocation5 + $0xd0] sm:$0xff]  ;;  %v227_v10 = vld [vmem:[#allocation5 + $0xd8] sm:$0xff]  ;;  %v228_v12 = vld [vmem:[#allocation5 + $0xe0] sm:$0xff] }
  0x5b   :  { %v2717_v11 = vpack.c.bf16 %v227_v10, %v226_v9  ;;  %v229_v13 = vld [vmem:[#allocation5 + $0xe8] sm:$0xff]  ;;  %v230_v14 = vld [vmem:[#allocation5 + $0xf0] sm:$0xff]  ;;  %v231_v16 = vld [vmem:[#allocation5 + $0xf8] sm:$0xff] }
  0x5c   :  { %v2725_v17 = vpack.c.bf16 %v231_v16, %v230_v14  ;;  %v1641_v18 = vld [vmem:[%s3851_s3] ss:$0 sm:$0xff] }
  0x5d   :  { %2684 = vmatpush3.bf16.msra.mxu0 %v2681_v15  ;;  %2712 = vmatpush3.bf16.msra.mxu1 %v2709_v35  ;;  %v2721_v15 = vpack.c.bf16 %v229_v13, %v228_v12 }
  0x5e   :  { %2686 = vmatprep.subr.bf16.mxu0 %v2685_v26  ;;  %2714 = vmatprep.subr.bf16.mxu1 %v2713_v39 }
  0x61   :  { %2688 = vmatpush3.bf16.msra.mxu0 %v2685_v26  ;;  %2716 = vmatpush3.bf16.msra.mxu1 %v2713_v39  ;;  %v3553_v39 = vld [vmem:[%s3851_s3 + $0x1] ss:$0 sm:$0xff] }
  0x62   :  { %2690 = vmatprep.subr.bf16.mxu0 %v2689_v32  ;;  %2718 = vmatprep.subr.bf16.mxu1 %v2717_v11 }
  0x65   :  { %2692 = vmatpush3.bf16.msra.mxu0 %v2689_v32  ;;  %2720 = vmatpush3.bf16.msra.mxu1 %v2717_v11 }
  0x66   :  { %2694 = vmatprep.subr.bf16.mxu0 %v2693_v38  ;;  %2722 = vmatprep.subr.bf16.mxu1 %v2721_v15 }
  0x69   :  { %2696 = vmatpush3.bf16.msra.mxu0 %v2693_v38  ;;  %2724 = vmatpush3.bf16.msra.mxu1 %v2721_v15 }
  0x6a   :  { %2729 = vmatprep.subr.bf16.mxu0 %v3303_v44  ;;  %2726 = vmatprep.subr.bf16.mxu1 %v2725_v17 }
  0x6c   :  { %2015 = vmatmul.mubr.f32.vlgmr.msra.gmra.mrb[0].mxu0 %v3416_v42 }
  0x6d   :  { %2731 = vmatpush3.bf16.msra.mxu0 %v3418_v43  ;;  %2017 = vmatprep.mubr.f32.mxu0 %v3421_v47 }
  0x6e   :  { %2732 = vmatprep.subr.bf16.mxu0 %v3303_v44  ;;  %2728 = vmatpush3.bf16.msra.mxu1 %v2725_v17  ;;  %v364_v17 = vld [vmem:[#allocation7 + $0x90] sm:$0xff] }
  0x6f   :  { %2753 = vmatprep.subr.bf16.mxu1 %v3303_v44 }
  0x70   :  { %2018 = vmatmul.mubr.f32.gmra.mrb[2].mxu0 %v3428_v49 }
  0x71   :  { %2734 = vmatpush3.bf16.msra.mxu0 %v3425_v48  ;;  %2020 = vmatprep.mubr.f32.mxu0 %v3431_v52 }
  0x72   :  { %2735 = vmatprep.subr.bf16.mxu0 %v3303_v44  ;;  %2059 = vmatmul.mubr.f32.vlgmr.msra.gmra.mrb[0].mxu1 %v3416_v42 }
  0x73   :  { %2755 = vmatpush3.bf16.msra.mxu1 %v3418_v43  ;;  %2061 = vmatprep.mubr.f32.mxu1 %v3421_v47 }
  0x74   :  { %2021 = vmatmul.mubr.f32.gmra.mrb[4].mxu0 %v3438_v54  ;;  %2756 = vmatprep.subr.bf16.mxu1 %v3303_v44 }
  0x75   :  { %2737 = vmatpush3.bf16.msra.mxu0 %v3435_v53  ;;  %2023 = vmatprep.mubr.f32.mxu0 %v3441_v57 }
  0x76   :  { %2738 = vmatprep.subr.bf16.mxu0 %v3303_v44  ;;  %2062 = vmatmul.mubr.f32.gmra.mrb[2].mxu1 %v3428_v49 }
  0x77   :  { %2758 = vmatpush3.bf16.msra.mxu1 %v3425_v48  ;;  %2064 = vmatprep.mubr.f32.mxu1 %v3431_v52 }
  0x78   :  { %2024 = vmatmul.mubr.f32.gmra.mrb[6].mxu0 %v3448_v59  ;;  %2759 = vmatprep.subr.bf16.mxu1 %v3303_v44 }
  0x79   :  { %2740 = vmatpush3.bf16.msra.mxu0 %v3445_v58  ;;  %2102 = vmatprep.mubr.msk.f32.mxu0 %vm3304_vm0, %v3305_v63 }
  0x7a   :  { %2741 = vmatprep.subr.bf16.mxu0 %v3303_v44  ;;  %2065 = vmatmul.mubr.f32.gmra.mrb[4].mxu1 %v3438_v54 }
  0x7b   :  { %2761 = vmatpush3.bf16.msra.mxu1 %v3435_v53  ;;  %2067 = vmatprep.mubr.f32.mxu1 %v3441_v57 }
  0x7c   :  { %2762 = vmatprep.subr.bf16.mxu1 %v3303_v44 }
  0x7d   :  { %2743 = vmatpush3.bf16.msra.mxu0 %v3453_v62 }
  0x7e   :  { %2744 = vmatprep.subr.bf16.mxu0 %v3303_v44  ;;  %2068 = vmatmul.mubr.f32.gmra.mrb[6].mxu1 %v3448_v59 }
  0x7f   :  { %2764 = vmatpush3.bf16.msra.mxu1 %v3445_v58  ;;  %2137 = vmatprep.mubr.msk.f32.mxu1 %vm3304_vm0, %v3305_v63 }
  0x80   :  { %2765 = vmatprep.subr.bf16.mxu1 %v3303_v44 }
  0x81   :  { %2746 = vmatpush3.bf16.msra.mxu0 %v3459_v2 }
  0x82   :  { %2747 = vmatprep.subr.bf16.mxu0 %v3303_v44 }
  0x83   :  { %2767 = vmatpush3.bf16.msra.mxu1 %v3453_v62 }
  0x84   :  { %2768 = vmatprep.subr.bf16.mxu1 %v3303_v44 }
  0x85   :  { %2749 = vmatpush3.bf16.msra.mxu0 %v3463_v5 }
  0x86   :  { %2750 = vmatprep.subr.bf16.mxu0 %v3303_v44 }
  0x87   :  { %2770 = vmatpush3.bf16.msra.mxu1 %v3459_v2 }
  0x88   :  { %2771 = vmatprep.subr.bf16.mxu1 %v3303_v44 }
  0x89   :  { %2752 = vmatpush3.bf16.msra.mxu0 %v3467_v8 }
  0x8a   :  { %2777 = vmatprep.subr.bf16.mxu0 %v3303_v44 }
  0x8b   :  { %2773 = vmatpush3.bf16.msra.mxu1 %v3463_v5 }
  0x8c   :  { %2103 = vmatmul.mubr.f32.vlgmr.msra.gmra.mrb[8].mxu0 %v3305_v63  ;;  %2774 = vmatprep.subr.bf16.mxu1 %v3303_v44 }
  0x8d   :  { %2779 = vmatpush3.bf16.msra.mxu0 %v3418_v43  ;;  %2172 = vmatprep.mubr.msk.f32.mxu0 %vm3304_vm0, %v3305_v63 }
  0x8e   :  { %2780 = vmatprep.subr.bf16.mxu0 %v3303_v44 }
  0x8f   :  { %2776 = vmatpush3.bf16.msra.mxu1 %v3467_v8 }
  0x90   :  { %2801 = vmatprep.subr.bf16.mxu1 %v3303_v44 }
  0x91   :  { %2782 = vmatpush3.bf16.msra.mxu0 %v3425_v48 }
  0x92   :  { %2783 = vmatprep.subr.bf16.mxu0 %v3303_v44 }
  0x95   :  { %2785 = vmatpush3.bf16.msra.mxu0 %v3435_v53 }
  0x96   :  { %2786 = vmatprep.subr.bf16.mxu0 %v3303_v44 }
  0x99   :  { %2788 = vmatpush3.bf16.msra.mxu0 %v3445_v58 }
  0x9a   :  { %2789 = vmatprep.subr.bf16.mxu0 %v3303_v44 }
  0x9d   :  { %2791 = vmatpush3.bf16.msra.mxu0 %v3453_v62 }
  0x9e   :  { %2792 = vmatprep.subr.bf16.mxu0 %v3303_v44 }
  0xa1   :  { %2794 = vmatpush3.bf16.msra.mxu0 %v3459_v2 }
  0xa2   :  { %2795 = vmatprep.subr.bf16.mxu0 %v3303_v44 }
  0xa5   :  { %2797 = vmatpush3.bf16.msra.mxu0 %v3463_v5 }
  0xa6   :  { %2798 = vmatprep.subr.bf16.mxu0 %v3303_v44 }
  0xa9   :  { %2800 = vmatpush3.bf16.msra.mxu0 %v3467_v8 }
  0xaa   :  { %2825 = vmatprep.subr.bf16.mxu0 %v3303_v44 }
 0x13f   :  { %v2016_v19 = vpop.f32.mrb[0].mxu0 }
 0x140   :  { %v182_v20 = vadd.f32 %v2016_v19, %v1641_v18  ;;  %v176_v21 = vpop.f32.mrb[1].mxu0  ;;  %v366_v19 = vld [vmem:[#allocation7 + $0xa0] sm:$0xff] }
 0x141   :  { %v177_v34 = vadd.f32 %v1641_v18, %v176_v21 }
 0x143   :  { %v2019_v22 = vpop.f32.mrb[2].mxu0 }
 0x144   :  { %v3520_v23 = vadd.f32 %v2019_v22, %v1641_v18  ;;  %v186_v24 = vpop.f32.mrb[3].mxu0  ;;  %v368_v22 = vld [vmem:[#allocation7 + $0xb0] sm:$0xff] }
 0x145   :  { %v3522_v25 = vadd.f32 %v1641_v18, %v186_v24  ;;  %v2060_v40 = vpop.f32.mrb[0].mxu1 }
 0x146   :  { %v3556_v41 = vadd.f32 %v2060_v40, %v3553_v39  ;;  %v3558_v42 = vpop.f32.mrb[1].mxu1  ;;  %v376_v40 = vld [vmem:[#allocation7 + $0xf0] sm:$0xff] }
 0x147   :  { %v2022_v26 = vpop.f32.mrb[4].mxu0 }
 0x148   :  { %v3524_v27 = vadd.f32 %v2022_v26, %v1641_v18  ;;  %v196_v28 = vpop.f32.mrb[5].mxu0  ;;  %v371_v26 = vld [vmem:[#allocation7 + $0xc8] sm:$0xff] }
 0x149   :  { %v3526_v29 = vadd.f32 %v1641_v18, %v196_v28  ;;  %v2063_v45 = vpop.f32.mrb[2].mxu1 }
 0x14a   :  { %v3561_v46 = vadd.f32 %v2063_v45, %v3553_v39  ;;  %v316_v47 = vpop.f32.mrb[3].mxu1  ;;  %v377_v45 = vld [vmem:[#allocation7 + $0xf8] sm:$0xff] }
 0x14b   :  { %v2025_v30 = vpop.f32.mrb[6].mxu0  ;;  %v3564_v49 = vadd.f32 %v3553_v39, %v316_v47  ;;  %v3698_v47 = vpack.c.bf16 %v377_v45, %v376_v40 }
 0x14c   :  { %v3528_v31 = vadd.f32 %v2025_v30, %v1641_v18  ;;  %v206_v32 = vpop.f32.mrb[7].mxu0 }
 0x14d   :  { %v3530_v33 = vadd.f32 %v1641_v18, %v206_v32  ;;  %v2066_v50 = vpop.f32.mrb[4].mxu1  ;;  %v365_v18 = vld [vmem:[#allocation7 + $0x98] sm:$0xff] }
 0x14e   :  { %v3567_v51 = vadd.f32 %v2066_v50, %v3553_v39  ;;  %v326_v52 = vpop.f32.mrb[5].mxu1 }
 0x14f   :  { %v3570_v54 = vadd.f32 %v3553_v39, %v326_v52 }
 0x151   :  { %v2069_v55 = vpop.f32.mrb[6].mxu1 }
 0x152   :  { %v3573_v56 = vadd.f32 %v2069_v55, %v3553_v39  ;;  %v336_v57 = vpop.f32.mrb[7].mxu1 }
 0x153   :  { %v3576_v59 = vadd.f32 %v3553_v39, %v336_v57 }
 0x15f   :  { %v444_v35 = vpop.f32.mrb[8].mxu0 }
 0x160   :  { %v448_v36 = vadd.f32 %v444_v35, %v177_v34  ;;  %v2104_v37 = vpop.f32.mrb[9].mxu0  ;;  %v373_v34 = vld [vmem:[#allocation7 + $0xd8] sm:$0xff] }
 0x161   :  { %v375_v37 = vld [vmem:[#allocation7 + $0xe8] sm:$0xff] }
 0x162   :  { %3147 = vtanh.f32 %v448_v36  ;;  %v374_v36 = vld [vmem:[#allocation7 + $0xe0] sm:$0xff] }
 0x16c   :  { %v3148_v38 = vpop.eup %3147 }
 0x16d   :  { %2138 = vmatmul.mubr.f32.vlgmr.msra.gmra.mrb[8].mxu1 %v3148_v38  ;;  %v3694_v38 = vpack.c.bf16 %v375_v37, %v374_v36  ;;  %v1545_v36 = vld [vmem:[#allocation8 + $0x78] sm:$0xff] }
 0x16e   :  { %2803 = vmatpush3.bf16.msra.mxu1 %v3418_v43  ;;  %2207 = vmatprep.mubr.msk.f32.mxu1 %vm3304_vm0, %v3305_v63 }
 0x16f   :  { %2804 = vmatprep.subr.bf16.mxu1 %v3303_v44 }
 0x172   :  { %2806 = vmatpush3.bf16.msra.mxu1 %v3425_v48 }
 0x173   :  { %2807 = vmatprep.subr.bf16.mxu1 %v3303_v44 }
 0x176   :  { %2809 = vmatpush3.bf16.msra.mxu1 %v3435_v53 }
 0x177   :  { %2810 = vmatprep.subr.bf16.mxu1 %v3303_v44 }
 0x17a   :  { %2812 = vmatpush3.bf16.msra.mxu1 %v3445_v58 }
 0x17b   :  { %2813 = vmatprep.subr.bf16.mxu1 %v3303_v44 }
 0x17e   :  { %2815 = vmatpush3.bf16.msra.mxu1 %v3453_v62 }
 0x17f   :  { %2816 = vmatprep.subr.bf16.mxu1 %v3303_v44 }
 0x182   :  { %2818 = vmatpush3.bf16.msra.mxu1 %v3459_v2 }
 0x183   :  { %2819 = vmatprep.subr.bf16.mxu1 %v3303_v44 }
 0x186   :  { %2821 = vmatpush3.bf16.msra.mxu1 %v3463_v5 }
 0x187   :  { %2822 = vmatprep.subr.bf16.mxu1 %v3303_v44 }
 0x18a   :  { %2824 = vmatpush3.bf16.msra.mxu1 %v3467_v8 }
 0x18b   :  { %2849 = vmatprep.subr.bf16.mxu1 %v3303_v44 }
 0x240   :  { %v516_v60 = vpop.f32.mrb[8].mxu1 }
 0x241   :  { %v520_v61 = vadd.f32 %v516_v60, %v182_v20  ;;  %v2139_v0 = vpop.f32.mrb[9].mxu1  ;;  %v367_v20 = vld [vmem:[#allocation7 + $0xa8] sm:$0xff] }
 0x242   :  { %v3663_v21 = vpack.c.bf16 %v367_v20, %v366_v19  ;;  %v1536_v19 = vld [vmem:[#allocation8 + $0x30] sm:$0xff]  ;;  %v1537_v20 = vld [vmem:[#allocation8 + $0x38] sm:$0xff] }
 0x243   :  { %3149 = vtanh.f32 %v520_v61 }
 0x24d   :  { %v3150_v1 = vpop.eup %3149 }
 0x24e   :  { %2173 = vmatmul.mubr.f32.vlgmr.msra.gmra.mrb[10].mxu0 %v3150_v1 }
 0x24f   :  { %2827 = vmatpush3.bf16.msra.mxu0 %v3418_v43  ;;  %2242 = vmatprep.mubr.msk.f32.mxu0 %vm3304_vm0, %v3305_v63 }
 0x250   :  { %2828 = vmatprep.subr.bf16.mxu0 %v3303_v44 }
 0x253   :  { %2830 = vmatpush3.bf16.msra.mxu0 %v3425_v48 }
 0x254   :  { %2831 = vmatprep.subr.bf16.mxu0 %v3303_v44 }
 0x257   :  { %2833 = vmatpush3.bf16.msra.mxu0 %v3435_v53 }
 0x258   :  { %2834 = vmatprep.subr.bf16.mxu0 %v3303_v44 }
 0x25b   :  { %2836 = vmatpush3.bf16.msra.mxu0 %v3445_v58 }
 0x25c   :  { %2837 = vmatprep.subr.bf16.mxu0 %v3303_v44 }
 0x25f   :  { %2839 = vmatpush3.bf16.msra.mxu0 %v3453_v62 }
 0x260   :  { %2840 = vmatprep.subr.bf16.mxu0 %v3303_v44 }
 0x263   :  { %2842 = vmatpush3.bf16.msra.mxu0 %v3459_v2 }
 0x264   :  { %2843 = vmatprep.subr.bf16.mxu0 %v3303_v44 }
 0x267   :  { %2845 = vmatpush3.bf16.msra.mxu0 %v3463_v5 }
 0x268   :  { %2846 = vmatprep.subr.bf16.mxu0 %v3303_v44 }
 0x26b   :  { %2848 = vmatpush3.bf16.msra.mxu0 %v3467_v8 }
 0x26c   :  { %2873 = vmatprep.subr.bf16.mxu0 %v3303_v44 }
 0x321   :  { %v588_v3 = vpop.f32.mrb[10].mxu0 }
 0x322   :  { %v592_v4 = vadd.f32 %v588_v3, %v3522_v25  ;;  %v2174_v6 = vpop.f32.mrb[11].mxu0  ;;  %v370_v25 = vld [vmem:[#allocation7 + $0xc0] sm:$0xff] }
 0x324   :  { %3151 = vtanh.f32 %v592_v4 }
 0x32e   :  { %v3152_v7 = vpop.eup %3151 }
 0x32f   :  { %2208 = vmatmul.mubr.f32.vlgmr.msra.gmra.mrb[10].mxu1 %v3152_v7 }
 0x330   :  { %2851 = vmatpush3.bf16.msra.mxu1 %v3418_v43  ;;  %2277 = vmatprep.mubr.msk.f32.mxu1 %vm3304_vm0, %v3305_v63 }
 0x331   :  { %2852 = vmatprep.subr.bf16.mxu1 %v3303_v44 }
 0x334   :  { %2854 = vmatpush3.bf16.msra.mxu1 %v3425_v48 }
 0x335   :  { %2855 = vmatprep.subr.bf16.mxu1 %v3303_v44 }
 0x338   :  { %2857 = vmatpush3.bf16.msra.mxu1 %v3435_v53 }
 0x339   :  { %2858 = vmatprep.subr.bf16.mxu1 %v3303_v44 }
 0x33c   :  { %2860 = vmatpush3.bf16.msra.mxu1 %v3445_v58 }
 0x33d   :  { %2861 = vmatprep.subr.bf16.mxu1 %v3303_v44 }
 0x340   :  { %2863 = vmatpush3.bf16.msra.mxu1 %v3453_v62 }
 0x341   :  { %2864 = vmatprep.subr.bf16.mxu1 %v3303_v44 }
 0x344   :  { %2866 = vmatpush3.bf16.msra.mxu1 %v3459_v2 }
 0x345   :  { %2867 = vmatprep.subr.bf16.mxu1 %v3303_v44 }
 0x348   :  { %2869 = vmatpush3.bf16.msra.mxu1 %v3463_v5 }
 0x349   :  { %2870 = vmatprep.subr.bf16.mxu1 %v3303_v44 }
 0x34c   :  { %2872 = vmatpush3.bf16.msra.mxu1 %v3467_v8 }
 0x34d   :  { %2897 = vmatprep.subr.bf16.mxu1 %v3303_v44 }
 0x402   :  { %v660_v9 = vpop.f32.mrb[10].mxu1 }
 0x403   :  { %v664_v10 = vadd.f32 %v660_v9, %v3520_v23  ;;  %v2209_v11 = vpop.f32.mrb[11].mxu1  ;;  %v369_v23 = vld [vmem:[#allocation7 + $0xb8] sm:$0xff] }
 0x404   :  { %v3667_v24 = vpack.c.bf16 %v369_v23, %v368_v22  ;;  %v1539_v22 = vld [vmem:[#allocation8 + $0x48] sm:$0xff] }
 0x405   :  { %3153 = vtanh.f32 %v664_v10 }
 0x40f   :  { %v3154_v12 = vpop.eup %3153 }
 0x410   :  { %2243 = vmatmul.mubr.f32.vlgmr.msra.gmra.mrb[12].mxu0 %v3154_v12 }
 0x411   :  { %2875 = vmatpush3.bf16.msra.mxu0 %v3418_v43  ;;  %2312 = vmatprep.mubr.msk.f32.mxu0 %vm3304_vm0, %v3305_v63 }
 0x412   :  { %2876 = vmatprep.subr.bf16.mxu0 %v3303_v44 }
 0x415   :  { %2878 = vmatpush3.bf16.msra.mxu0 %v3425_v48 }
 0x416   :  { %2879 = vmatprep.subr.bf16.mxu0 %v3303_v44 }
 0x419   :  { %2881 = vmatpush3.bf16.msra.mxu0 %v3435_v53 }
 0x41a   :  { %2882 = vmatprep.subr.bf16.mxu0 %v3303_v44 }
 0x41d   :  { %2884 = vmatpush3.bf16.msra.mxu0 %v3445_v58 }
 0x41e   :  { %2885 = vmatprep.subr.bf16.mxu0 %v3303_v44 }
 0x421   :  { %2887 = vmatpush3.bf16.msra.mxu0 %v3453_v62 }
 0x422   :  { %2888 = vmatprep.subr.bf16.mxu0 %v3303_v44 }
 0x425   :  { %2890 = vmatpush3.bf16.msra.mxu0 %v3459_v2 }
 0x426   :  { %2891 = vmatprep.subr.bf16.mxu0 %v3303_v44 }
 0x429   :  { %2893 = vmatpush3.bf16.msra.mxu0 %v3463_v5 }
 0x42a   :  { %2894 = vmatprep.subr.bf16.mxu0 %v3303_v44 }
 0x42d   :  { %2896 = vmatpush3.bf16.msra.mxu0 %v3467_v8 }
 0x42e   :  { %2921 = vmatprep.subr.bf16.mxu0 %v3303_v44 }
 0x4e3   :  { %v732_v13 = vpop.f32.mrb[12].mxu0 }
 0x4e4   :  { %v736_v14 = vadd.f32 %v732_v13, %v3526_v29  ;;  %v2244_v15 = vpop.f32.mrb[13].mxu0 }
 0x4e6   :  { %3155 = vtanh.f32 %v736_v14 }
 0x4f0   :  { %v3156_v16 = vpop.eup %3155 }
 0x4f1   :  { %2278 = vmatmul.mubr.f32.vlgmr.msra.gmra.mrb[12].mxu1 %v3156_v16 }
 0x4f2   :  { %2899 = vmatpush3.bf16.msra.mxu1 %v3418_v43  ;;  %2347 = vmatprep.mubr.msk.f32.mxu1 %vm3304_vm0, %v3305_v63 }
 0x4f3   :  { %2900 = vmatprep.subr.bf16.mxu1 %v3303_v44 }
 0x4f6   :  { %2902 = vmatpush3.bf16.msra.mxu1 %v3425_v48 }
 0x4f7   :  { %2903 = vmatprep.subr.bf16.mxu1 %v3303_v44 }
 0x4fa   :  { %2905 = vmatpush3.bf16.msra.mxu1 %v3435_v53 }
 0x4fb   :  { %2906 = vmatprep.subr.bf16.mxu1 %v3303_v44 }
 0x4fe   :  { %2908 = vmatpush3.bf16.msra.mxu1 %v3445_v58 }
 0x4ff   :  { %2909 = vmatprep.subr.bf16.mxu1 %v3303_v44 }
 0x502   :  { %2911 = vmatpush3.bf16.msra.mxu1 %v3453_v62  ;;  %v362_v62 = vld [vmem:[#allocation7 + $0x80] sm:$0xff] }
 0x503   :  { %2912 = vmatprep.subr.bf16.mxu1 %v3303_v44 }
 0x506   :  { %2914 = vmatpush3.bf16.msra.mxu1 %v3459_v2  ;;  %v363_v2 = vld [vmem:[#allocation7 + $0x88] sm:$0xff] }
 0x507   :  { %2915 = vmatprep.subr.bf16.mxu1 %v3303_v44 }
 0x50a   :  { %2917 = vmatpush3.bf16.msra.mxu1 %v3463_v5  ;;  %v3656_v5 = vpack.c.bf16 %v363_v2, %v362_v62  ;;  %v1532_v62 = vld [vmem:[#allocation8 + $0x10] sm:$0xff] }
 0x50b   :  { %2918 = vmatprep.subr.bf16.mxu1 %v3303_v44 }
 0x50e   :  { %2920 = vmatpush3.bf16.msra.mxu1 %v3467_v8  ;;  %v3659_v8 = vpack.c.bf16 %v365_v18, %v364_v17  ;;  %v1533_v17 = vld [vmem:[#allocation8 + $0x18] sm:$0xff]  ;;  %v1534_v18 = vld [vmem:[#allocation8 + $0x20] sm:$0xff] }
 0x50f   :  { %2945 = vmatprep.subr.bf16.mxu1 %v3303_v44 }
 0x5c4   :  { %v804_v43 = vpop.f32.mrb[12].mxu1 }
 0x5c5   :  { %v808_v48 = vadd.f32 %v804_v43, %v3524_v27  ;;  %v2279_v53 = vpop.f32.mrb[13].mxu1  ;;  %v3671_v27 = vpack.c.bf16 %v371_v26, %v370_v25 }
 0x5c6   :  { %v1530_v53 = vld [vmem:[#allocation8] sm:$0xff] }
 0x5c7   :  { %3157 = vtanh.f32 %v808_v48 }
 0x5d1   :  { %v3158_v58 = vpop.eup %3157 }
 0x5d2   :  { %2313 = vmatmul.mubr.f32.vlgmr.msra.gmra.mrb[14].mxu0 %v3158_v58  ;;  %v1531_v58 = vld [vmem:[#allocation8 + $0x8] sm:$0xff] }
 0x5d3   :  { %2382 = vmatprep.mubr.msk.f32.mxu0 %vm3304_vm0, %v3305_v63  ;;  %2923 = vmatpush3.bf16.msra.mxu0 %v3656_v5  ;;  %v3114_v2 = vpack.c.bf16 %v1531_v58, %v1530_v53 }
 0x5d4   :  { %2924 = vmatprep.subr.bf16.mxu0 %v3303_v44 }
 0x5d7   :  { %2926 = vmatpush3.bf16.msra.mxu0 %v3659_v8 }
 0x5d8   :  { %2927 = vmatprep.subr.bf16.mxu0 %v3303_v44 }
 0x5db   :  { %2929 = vmatpush3.bf16.msra.mxu0 %v3663_v21 }
 0x5dc   :  { %2930 = vmatprep.subr.bf16.mxu0 %v3303_v44 }
 0x5df   :  { %2932 = vmatpush3.bf16.msra.mxu0 %v3667_v24 }
 0x5e0   :  { %2933 = vmatprep.subr.bf16.mxu0 %v3303_v44 }
 0x5e3   :  { %2935 = vmatpush3.bf16.msra.mxu0 %v3671_v27 }
 0x5e4   :  { %2936 = vmatprep.subr.bf16.mxu0 %v3303_v44 }
 0x6a5   :  { %v876_v28 = vpop.f32.mrb[14].mxu0 }
 0x6a6   :  { %v880_v29 = vadd.f32 %v876_v28, %v3530_v33  ;;  %v2314_v30 = vpop.f32.mrb[15].mxu0  ;;  %v372_v33 = vld [vmem:[#allocation7 + $0xd0] sm:$0xff] }
 0x6a7   :  { %v3689_v35 = vpack.c.bf16 %v373_v34, %v372_v33  ;;  %v1540_v28 = vld [vmem:[#allocation8 + $0x50] sm:$0xff]  ;;  %v1543_v33 = vld [vmem:[#allocation8 + $0x68] sm:$0xff] }
 0x6a8   :  { %3159 = vtanh.f32 %v880_v29  ;;  %v1541_v29 = vld [vmem:[#allocation8 + $0x58] sm:$0xff] }
 0x6a9   :  { %2938 = vmatpush3.bf16.msra.mxu0 %v3689_v35  ;;  %v3129_v30 = vpack.c.bf16 %v1541_v29, %v1540_v28 }
 0x6aa   :  { %2939 = vmatprep.subr.bf16.mxu0 %v3303_v44 }
 0x6ad   :  { %2941 = vmatpush3.bf16.msra.mxu0 %v3694_v38 }
 0x6ae   :  { %2942 = vmatprep.subr.bf16.mxu0 %v3303_v44 }
 0x6b1   :  { %2944 = vmatpush3.bf16.msra.mxu0 %v3698_v47 }
 0x6b2   :  { %v3160_v32 = vpop.eup %3159  ;;  %2969 = vmatprep.subr.bf16.mxu0 %v3303_v44 }
 0x6b3   :  { %2348 = vmatmul.mubr.f32.vlgmr.msra.gmra.mrb[14].mxu1 %v3160_v32  ;;  %v1542_v32 = vld [vmem:[#allocation8 + $0x60] sm:$0xff] }
 0x6b4   :  { %2947 = vmatpush3.bf16.msra.mxu1 %v3656_v5  ;;  %2417 = vmatprep.mubr.msk.f32.mxu1 %vm3304_vm0, %v3305_v63  ;;  %v3132_v34 = vpack.c.bf16 %v1543_v33, %v1542_v32 }
 0x6b5   :  { %2948 = vmatprep.subr.bf16.mxu1 %v3303_v44 }
 0x6b8   :  { %2950 = vmatpush3.bf16.msra.mxu1 %v3659_v8 }
 0x6b9   :  { %2951 = vmatprep.subr.bf16.mxu1 %v3303_v44 }
 0x6bc   :  { %2953 = vmatpush3.bf16.msra.mxu1 %v3663_v21 }
 0x6bd   :  { %2954 = vmatprep.subr.bf16.mxu1 %v3303_v44 }
 0x6c0   :  { %2956 = vmatpush3.bf16.msra.mxu1 %v3667_v24 }
 0x6c1   :  { %2957 = vmatprep.subr.bf16.mxu1 %v3303_v44 }
 0x6c4   :  { %2959 = vmatpush3.bf16.msra.mxu1 %v3671_v27 }
 0x6c5   :  { %2960 = vmatprep.subr.bf16.mxu1 %v3303_v44 }
 0x6c8   :  { %2962 = vmatpush3.bf16.msra.mxu1 %v3689_v35 }
 0x6c9   :  { %2963 = vmatprep.subr.bf16.mxu1 %v3303_v44 }
 0x6cc   :  { %2965 = vmatpush3.bf16.msra.mxu1 %v3694_v38 }
 0x6cd   :  { %2966 = vmatprep.subr.bf16.mxu1 %v3303_v44 }
 0x6d0   :  { %2968 = vmatpush3.bf16.msra.mxu1 %v3698_v47 }
 0x6d1   :  { %2993 = vmatprep.subr.bf16.mxu1 %v3303_v44 }
 0x786   :  { %v948_v50 = vpop.f32.mrb[14].mxu1 }
 0x787   :  { %v952_v52 = vadd.f32 %v948_v50, %v3528_v31  ;;  %v2349_v55 = vpop.f32.mrb[15].mxu1  ;;  %v307_v31 = vadd.f32 %v3553_v39, %v3558_v42 }
 0x789   :  { %3161 = vtanh.f32 %v952_v52 }
 0x793   :  { %v3162_v57 = vpop.eup %3161 }
 0x794   :  { %2383 = vmatmul.mubr.f32.vlgmr.msra.gmra.mrb[16].mxu0 %v3162_v57 }
 0x795   :  { %2971 = vmatpush3.bf16.msra.mxu0 %v3656_v5  ;;  %2452 = vmatprep.mubr.msk.f32.mxu0 %vm3304_vm0, %v3305_v63 }
 0x796   :  { %2972 = vmatprep.subr.bf16.mxu0 %v3303_v44 }
 0x799   :  { %2974 = vmatpush3.bf16.msra.mxu0 %v3659_v8 }
 0x79a   :  { %2975 = vmatprep.subr.bf16.mxu0 %v3303_v44 }
 0x79d   :  { %2977 = vmatpush3.bf16.msra.mxu0 %v3663_v21 }
 0x79e   :  { %2978 = vmatprep.subr.bf16.mxu0 %v3303_v44 }
 0x7a1   :  { %2980 = vmatpush3.bf16.msra.mxu0 %v3667_v24 }
 0x7a2   :  { %2981 = vmatprep.subr.bf16.mxu0 %v3303_v44 }
 0x7a5   :  { %2983 = vmatpush3.bf16.msra.mxu0 %v3671_v27 }
 0x7a6   :  { %2984 = vmatprep.subr.bf16.mxu0 %v3303_v44 }
 0x7a9   :  { %2986 = vmatpush3.bf16.msra.mxu0 %v3689_v35 }
 0x7aa   :  { %2987 = vmatprep.subr.bf16.mxu0 %v3303_v44 }
 0x7ad   :  { %2989 = vmatpush3.bf16.msra.mxu0 %v3694_v38 }
 0x7ae   :  { %2990 = vmatprep.subr.bf16.mxu0 %v3303_v44 }
 0x7b1   :  { %2992 = vmatpush3.bf16.msra.mxu0 %v3698_v47 }
 0x7b2   :  { %3017 = vmatprep.subr.bf16.mxu0 %v3303_v44 }
 0x867   :  { %v1020_v60 = vpop.f32.mrb[16].mxu0 }
 0x868   :  { %v1024_v61 = vadd.f32 %v1020_v60, %v307_v31  ;;  %v2384_v0 = vpop.f32.mrb[17].mxu0 }
 0x86a   :  { %3163 = vtanh.f32 %v1024_v61 }
 0x874   :  { %v3164_v1 = vpop.eup %3163 }
 0x875   :  { %2418 = vmatmul.mubr.f32.vlgmr.msra.gmra.mrb[16].mxu1 %v3164_v1 }
 0x876   :  { %2995 = vmatpush3.bf16.msra.mxu1 %v3656_v5  ;;  %2487 = vmatprep.mubr.msk.f32.mxu1 %vm3304_vm0, %v3305_v63 }
 0x877   :  { %2996 = vmatprep.subr.bf16.mxu1 %v3303_v44 }
 0x87a   :  { %2998 = vmatpush3.bf16.msra.mxu1 %v3659_v8 }
 0x87b   :  { %2999 = vmatprep.subr.bf16.mxu1 %v3303_v44 }
 0x87e   :  { %3001 = vmatpush3.bf16.msra.mxu1 %v3663_v21 }
 0x87f   :  { %3002 = vmatprep.subr.bf16.mxu1 %v3303_v44 }
 0x882   :  { %3004 = vmatpush3.bf16.msra.mxu1 %v3667_v24 }
 0x883   :  { %3005 = vmatprep.subr.bf16.mxu1 %v3303_v44 }
 0x886   :  { %3007 = vmatpush3.bf16.msra.mxu1 %v3671_v27 }
 0x887   :  { %3008 = vmatprep.subr.bf16.mxu1 %v3303_v44 }
 0x88a   :  { %3010 = vmatpush3.bf16.msra.mxu1 %v3689_v35 }
 0x88b   :  { %3011 = vmatprep.subr.bf16.mxu1 %v3303_v44 }
 0x88e   :  { %3013 = vmatpush3.bf16.msra.mxu1 %v3694_v38 }
 0x88f   :  { %3014 = vmatprep.subr.bf16.mxu1 %v3303_v44 }
 0x892   :  { %3016 = vmatpush3.bf16.msra.mxu1 %v3698_v47 }
 0x893   :  { %3041 = vmatprep.subr.bf16.mxu1 %v3303_v44 }
 0x948   :  { %v1092_v39 = vpop.f32.mrb[16].mxu1 }
 0x949   :  { %v1096_v42 = vadd.f32 %v1092_v39, %v3556_v41  ;;  %v2419_v3 = vpop.f32.mrb[17].mxu1 }
 0x94b   :  { %3165 = vtanh.f32 %v1096_v42 }
 0x955   :  { %v3166_v4 = vpop.eup %3165 }
 0x956   :  { %2453 = vmatmul.mubr.f32.vlgmr.msra.gmra.mrb[18].mxu0 %v3166_v4 }
 0x957   :  { %3019 = vmatpush3.bf16.msra.mxu0 %v3656_v5  ;;  %2522 = vmatprep.mubr.msk.f32.mxu0 %vm3304_vm0, %v3305_v63 }
 0x958   :  { %3020 = vmatprep.subr.bf16.mxu0 %v3303_v44 }
 0x95b   :  { %3022 = vmatpush3.bf16.msra.mxu0 %v3659_v8 }
 0x95c   :  { %3023 = vmatprep.subr.bf16.mxu0 %v3303_v44 }
 0x95f   :  { %3025 = vmatpush3.bf16.msra.mxu0 %v3663_v21 }
 0x960   :  { %3026 = vmatprep.subr.bf16.mxu0 %v3303_v44 }
 0x963   :  { %3028 = vmatpush3.bf16.msra.mxu0 %v3667_v24 }
 0x964   :  { %3029 = vmatprep.subr.bf16.mxu0 %v3303_v44 }
 0x967   :  { %3031 = vmatpush3.bf16.msra.mxu0 %v3671_v27 }
 0x968   :  { %3032 = vmatprep.subr.bf16.mxu0 %v3303_v44 }
 0x96b   :  { %3034 = vmatpush3.bf16.msra.mxu0 %v3689_v35 }
 0x96c   :  { %3035 = vmatprep.subr.bf16.mxu0 %v3303_v44 }
 0x96f   :  { %3037 = vmatpush3.bf16.msra.mxu0 %v3694_v38 }
 0x970   :  { %3038 = vmatprep.subr.bf16.mxu0 %v3303_v44 }
 0x973   :  { %3040 = vmatpush3.bf16.msra.mxu0 %v3698_v47 }
 0x974   :  { %3065 = vmatprep.subr.bf16.mxu0 %v3303_v44 }
 0xa29   :  { %v1164_v41 = vpop.f32.mrb[18].mxu0 }
 0xa2a   :  { %v1168_v6 = vadd.f32 %v1164_v41, %v3564_v49  ;;  %v2454_v7 = vpop.f32.mrb[19].mxu0 }
 0xa2c   :  { %3167 = vtanh.f32 %v1168_v6 }
 0xa36   :  { %v3168_v9 = vpop.eup %3167 }
 0xa37   :  { %2488 = vmatmul.mubr.f32.vlgmr.msra.gmra.mrb[18].mxu1 %v3168_v9 }
 0xa38   :  { %3043 = vmatpush3.bf16.msra.mxu1 %v3656_v5  ;;  %2557 = vmatprep.mubr.msk.f32.mxu1 %vm3304_vm0, %v3305_v63 }
 0xa39   :  { %3044 = vmatprep.subr.bf16.mxu1 %v3303_v44 }
 0xa3c   :  { %3046 = vmatpush3.bf16.msra.mxu1 %v3659_v8 }
 0xa3d   :  { %3047 = vmatprep.subr.bf16.mxu1 %v3303_v44 }
 0xa40   :  { %3049 = vmatpush3.bf16.msra.mxu1 %v3663_v21 }
 0xa41   :  { %3050 = vmatprep.subr.bf16.mxu1 %v3303_v44 }
 0xa44   :  { %3052 = vmatpush3.bf16.msra.mxu1 %v3667_v24 }
 0xa45   :  { %3053 = vmatprep.subr.bf16.mxu1 %v3303_v44 }
 0xa48   :  { %3055 = vmatpush3.bf16.msra.mxu1 %v3671_v27 }
 0xa49   :  { %3056 = vmatprep.subr.bf16.mxu1 %v3303_v44 }
 0xa4c   :  { %3058 = vmatpush3.bf16.msra.mxu1 %v3689_v35 }
 0xa4d   :  { %3059 = vmatprep.subr.bf16.mxu1 %v3303_v44 }
 0xa50   :  { %3061 = vmatpush3.bf16.msra.mxu1 %v3694_v38 }
 0xa51   :  { %3062 = vmatprep.subr.bf16.mxu1 %v3303_v44 }
 0xa54   :  { %3064 = vmatpush3.bf16.msra.mxu1 %v3698_v47 }
 0xa55   :  { %3089 = vmatprep.subr.bf16.mxu1 %v3303_v44 }
 0xb0a   :  { %v1236_v49 = vpop.f32.mrb[18].mxu1 }
 0xb0b   :  { %v1240_v10 = vadd.f32 %v1236_v49, %v3561_v46  ;;  %v2489_v11 = vpop.f32.mrb[19].mxu1 }
 0xb0d   :  { %3169 = vtanh.f32 %v1240_v10 }
 0xb17   :  { %v3170_v12 = vpop.eup %3169 }
 0xb18   :  { %2523 = vmatmul.mubr.f32.vlgmr.msra.gmra.mrb[20].mxu0 %v3170_v12 }
 0xb19   :  { %3067 = vmatpush3.bf16.msra.mxu0 %v3656_v5  ;;  %2592 = vmatprep.mubr.msk.f32.mxu0 %vm3304_vm0, %v3305_v63 }
 0xb1a   :  { %3068 = vmatprep.subr.bf16.mxu0 %v3303_v44 }
 0xb1d   :  { %3070 = vmatpush3.bf16.msra.mxu0 %v3659_v8 }
 0xb1e   :  { %3071 = vmatprep.subr.bf16.mxu0 %v3303_v44 }
 0xb21   :  { %3073 = vmatpush3.bf16.msra.mxu0 %v3663_v21 }
 0xb22   :  { %3074 = vmatprep.subr.bf16.mxu0 %v3303_v44 }
 0xb25   :  { %3076 = vmatpush3.bf16.msra.mxu0 %v3667_v24 }
 0xb26   :  { %3077 = vmatprep.subr.bf16.mxu0 %v3303_v44 }
 0xb29   :  { %3079 = vmatpush3.bf16.msra.mxu0 %v3671_v27 }
 0xb2a   :  { %3080 = vmatprep.subr.bf16.mxu0 %v3303_v44 }
 0xb2d   :  { %3082 = vmatpush3.bf16.msra.mxu0 %v3689_v35 }
 0xb2e   :  { %3083 = vmatprep.subr.bf16.mxu0 %v3303_v44 }
 0xb31   :  { %3085 = vmatpush3.bf16.msra.mxu0 %v3694_v38 }
 0xb32   :  { %3086 = vmatprep.subr.bf16.mxu0 %v3303_v44 }
 0xb35   :  { %3088 = vmatpush3.bf16.msra.mxu0 %v3698_v47 }
 0xb36   :  { %3113 = vmatprep.subr.bf16.mxu0 %v3303_v44 }
 0xbeb   :  { %v1308_v46 = vpop.f32.mrb[20].mxu0 }
 0xbec   :  { %v1312_v13 = vadd.f32 %v1308_v46, %v3570_v54  ;;  %v2524_v14 = vpop.f32.mrb[21].mxu0 }
 0xbee   :  { %3171 = vtanh.f32 %v1312_v13 }
 0xbf8   :  { %v3172_v15 = vpop.eup %3171 }
 0xbf9   :  { %2558 = vmatmul.mubr.f32.vlgmr.msra.gmra.mrb[20].mxu1 %v3172_v15 }
 0xbfa   :  { %3091 = vmatpush3.bf16.msra.mxu1 %v3656_v5  ;;  %2627 = vmatprep.mubr.msk.f32.mxu1 %vm3304_vm0, %v3305_v63  ;;  %v3117_v5 = vpack.c.bf16 %v1533_v17, %v1532_v62 }
 0xbfb   :  { %3092 = vmatprep.subr.bf16.mxu1 %v3303_v44 }
 0xbfe   :  { %3094 = vmatpush3.bf16.msra.mxu1 %v3659_v8  ;;  %v1535_v8 = vld [vmem:[#allocation8 + $0x28] sm:$0xff] }
 0xbff   :  { %3095 = vmatprep.subr.bf16.mxu1 %v3303_v44 }
 0xc02   :  { %3097 = vmatpush3.bf16.msra.mxu1 %v3663_v21  ;;  %v3123_v21 = vpack.c.bf16 %v1537_v20, %v1536_v19 }
 0xc03   :  { %3098 = vmatprep.subr.bf16.mxu1 %v3303_v44 }
 0xc06   :  { %3100 = vmatpush3.bf16.msra.mxu1 %v3667_v24 }
 0xc07   :  { %3101 = vmatprep.subr.bf16.mxu1 %v3303_v44 }
 0xc0a   :  { %3103 = vmatpush3.bf16.msra.mxu1 %v3671_v27 }
 0xc0b   :  { %3104 = vmatprep.subr.bf16.mxu1 %v3303_v44 }
 0xc0e   :  { %3106 = vmatpush3.bf16.msra.mxu1 %v3689_v35  ;;  %v1544_v35 = vld [vmem:[#allocation8 + $0x70] sm:$0xff] }
 0xc0f   :  { %3107 = vmatprep.subr.bf16.mxu1 %v3303_v44  ;;  %v3135_v37 = vpack.c.bf16 %v1545_v36, %v1544_v35 }
 0xc12   :  { %3109 = vmatpush3.bf16.msra.mxu1 %v3694_v38 }
 0xc13   :  { %3110 = vmatprep.subr.bf16.mxu1 %v3303_v44 }
 0xc16   :  { %3112 = vmatpush3.bf16.msra.mxu1 %v3698_v47  ;;  %v1644_v47 = vld [vmem:[%s3853_s5] ss:$0 sm:$0xff] }
 0xccc   :  { %v1380_v54 = vpop.f32.mrb[20].mxu1 }
 0xccd   :  { %v1384_v16 = vadd.f32 %v1380_v54, %v3567_v51  ;;  %v2559_v43 = vpop.f32.mrb[21].mxu1  ;;  %v3120_v51 = vpack.c.bf16 %v1535_v8, %v1534_v18 }
 0xccf   :  { %3173 = vtanh.f32 %v1384_v16 }
 0xcd9   :  { %v3174_v48 = vpop.eup %3173 }
 0xcda   :  { %2593 = vmatmul.mubr.f32.vlgmr.msra.gmra.mrb[22].mxu0 %v3174_v48 }
 0xcdb   :  { %2662 = vmatprep.mubr.msk.f32.mxu0 %vm3304_vm0, %v3305_v63  ;;  %3115 = vmatpush3.bf16.msra.mxu0 %v3114_v2  ;;  %v1538_v63 = vld [vmem:[#allocation8 + $0x40] sm:$0xff] }
 0xcdc   :  { %3116 = vmatprep.subr.bf16.mxu0 %v3303_v44  ;;  %v3126_v23 = vpack.c.bf16 %v1539_v22, %v1538_v63 }
 0xcdf   :  { %3118 = vmatpush3.bf16.msra.mxu0 %v3117_v5 }
 0xce0   :  { %3119 = vmatprep.subr.bf16.mxu0 %v3303_v44 }
 0xce3   :  { %3121 = vmatpush3.bf16.msra.mxu0 %v3120_v51 }
 0xce4   :  { %3122 = vmatprep.subr.bf16.mxu0 %v3303_v44 }
 0xce7   :  { %3124 = vmatpush3.bf16.msra.mxu0 %v3123_v21 }
 0xce8   :  { %3125 = vmatprep.subr.bf16.mxu0 %v3303_v44 }
 0xceb   :  { %3127 = vmatpush3.bf16.msra.mxu0 %v3126_v23 }
 0xcec   :  { %3128 = vmatprep.subr.bf16.mxu0 %v3303_v44 }
 0xcef   :  { %3130 = vmatpush3.bf16.msra.mxu0 %v3129_v30 }
 0xcf0   :  { %3131 = vmatprep.subr.bf16.mxu0 %v3303_v44 }
 0xcf3   :  { %3133 = vmatpush3.bf16.msra.mxu0 %v3132_v34 }
 0xcf4   :  { %3134 = vmatprep.subr.bf16.mxu0 %v3303_v44 }
 0xcf7   :  { %3136 = vmatpush3.bf16.msra.mxu0 %v3135_v37 }
 0xdad   :  { %v1452_v24 = vpop.f32.mrb[22].mxu0 }
 0xdae   :  { %v1456_v25 = vadd.f32 %v1452_v24, %v3576_v59  ;;  %v2594_v26 = vpop.f32.mrb[23].mxu0 }
 0xdb0   :  { %3175 = vtanh.f32 %v1456_v25 }
 0xdba   :  { %v3176_v27 = vpop.eup %3175 }
 0xdbb   :  { %2628 = vmatmul.mubr.f32.vlgmr.msra.gmra.mrb[22].mxu1 %v3176_v27 }
 0xe8e   :  { %v1524_v59 = vpop.f32.mrb[22].mxu1 }
 0xe8f   :  { %v1528_v38 = vadd.f32 %v1524_v59, %v3573_v56  ;;  %v2629_v40 = vpop.f32.mrb[23].mxu1 }
 0xe91   :  { %3177 = vtanh.f32 %v1528_v38 }
 0xe9b   :  { %v3178_v45 = vpop.eup %3177 }
 0xe9c   :  { %2663 = vmatmul.mubr.f32.vlgmr.msra.gmra.mrb[24].mxu0 %v3178_v45 }
 0xf6f   :  { %v1619_v50 = vpop.f32.mrb[24].mxu0 }
 0xf70   :  { %v1620_v52 = vadd.f32 %v1644_v47, %v1619_v50  ;;  %v2664_v55 = vpop.f32.mrb[25].mxu0 }
 0xf72   :  { %1623 = vst [vmem:[#allocation10] sm:$0xff] %v1620_v52 }
 0xf73   :  { %3278 = shalt.err (!%p3275_p8)
}
 0xf74   :  { %s3279_s29 = scalar_lea.hbm %s3854_s6, 128 }
 0xf75   :  { %p3280_p9 = scmp.ne.s32.totalorder %s3854_s6, %s3279_s29  ;;  %p3283_p10 = scmp.lt.u32.totalorder %s3279_s29, %s3854_s6 }
 0xf77   :  { %p3285_p11 = pnand %p3283_p10, %p3280_p9 }
 0xf79   :  { %3288 = shalt.err (!%p3285_p11)
}
 0xf7a   :  { %1633 = dma.vmem_to_hbm [thread:$0]  %s1631_s25, 128, %s3854_s6, [#allocation4]  }
 0xf7b   :  { %3295 = dma.done.wait [#allocation4], 128  }
 0xf7c   :  { %3296 = vsyncadd [#allocation4], 4294967168 }
 0xf7d   :  { %1637 = vsyncpa [#allocation3], 1 }
 0xf7e   :  { %1638 = vsyncpa [#allocation6], 1 }
 0xf7f   :  { %1639 = vsyncpa [#allocation9], 1 }
 0xf80   :  { %1640 = vsyncpa [#allocation4], 1 }

</bundles_post_ra>
